<compile_context>
chip_gen: v7x
topology: tpu7x:2x2x1
jax: 0.10.0
libtpu: 0.0.40
codegen_flags: <defaults>
</compile_context>

<pallas_src>
import functools

import jax
import jax.numpy as jnp
from jax import lax
from jax.experimental import pallas as pl
from jax.experimental.pallas import tpu as pltpu


def _shift_down(x, period):
    """out[r] = x[r-1]; zero where r % period == 0 (conv 'previous' tap)."""
    rolled = pltpu.roll(x, 1, axis=0)
    r = lax.broadcasted_iota(jnp.int32, x.shape, 0)
    return jnp.where((r % period) != 0, rolled, 0.0)


def _shift_up(x, period):
    """out[r] = x[r+1]; zero where r % period == period-1 (conv 'next' tap)."""
    n = x.shape[0]
    rolled = pltpu.roll(x, n - 1, axis=0)  # rotate by -1 (non-negative shift)
    r = lax.broadcasted_iota(jnp.int32, x.shape, 0)
    return jnp.where((r % period) != (period - 1), rolled, 0.0)


def simple_cnn_kernel(x_ref, w1_ref, b1_ref, w2_ref, b2_ref,
                      wf1_ref, bf1_ref, wf2_ref, bf2_ref, o_ref,
                      h1_scr, h2_scr, *, Bt, L, L2, L4):
    f32 = jnp.float32

    # ---- conv1 (1->16, k=3, pad=1): pure VPU -------------------------------
    # Single input channel lane-broadcast against the three (1,16) tap rows:
    # 3 vmul + 2 vadd on a 16-lane tile; no MXU round-trip, no lane concat.
    x = x_ref[...]                                           # (Bt*L, 1)
    w1 = w1_ref[...]                                         # (3, 16)
    h1 = (_shift_down(x, L) * w1[0:1, :]
          + x * w1[1:2, :]
          + _shift_up(x, L) * w1[2:3, :]
          + b1_ref[...])                                     # (Bt*L, 16)
    h1_scr[...] = jnp.maximum(h1, 0.0)

    # ---- maxpool k=2 s=2: VPU max of even/odd strided row reads ------------
    # TODO(synk): verify via bundle dump that stride-2/stride-L2 sublane reads
    # lower cheaply; if not, switch to roll-based pooling / relayout.
    half = Bt * L2
    p1 = jnp.maximum(h1_scr[pl.ds(0, half, stride=2), :],
                     h1_scr[pl.ds(1, half, stride=2), :])    # (Bt*L2, 16)

    # ---- conv2 (16->32, k=3, pad=1): 3 accumulated per-tap matmuls ---------
    # (no 48-lane operand build; tap shift = XLU roll + period mask)
    h2 = jnp.dot(_shift_down(p1, L2), w2_ref[0], preferred_element_type=f32)
    h2 = h2 + jnp.dot(p1, w2_ref[1], preferred_element_type=f32)
    h2 = h2 + jnp.dot(_shift_up(p1, L2), w2_ref[2], preferred_element_type=f32)
    h2_scr[...] = jnp.maximum(h2 + b2_ref[...], 0.0)         # (Bt*L2, 32)

    # ---- maxpool + flatten + fc1: L4 accumulated (Bt,32)x(32,64) matmuls ---
    # Each pooled chunk feeds straight into its fc1 weight block; no L4-way
    # lane concat.  L4 is tiny/static; use lax.fori_loop(unroll=True) if it
    # ever grows beyond a handful.
    fc1 = jnp.zeros((Bt, 64), f32)
    for m in range(L4):
        even = h2_scr[pl.ds(2 * m, Bt, stride=L2), :]        # (Bt, 32)
        odd = h2_scr[pl.ds(2 * m + 1, Bt, stride=L2), :]     # (Bt, 32)
        fc1 = fc1 + jnp.dot(jnp.maximum(even, odd), wf1_ref[m],
                            preferred_element_type=f32)
    fc1 = jnp.maximum(fc1 + bf1_ref[...], 0.0)               # (Bt, 64)

    # ---- fc2: single lane-dense (Bt, 128) store -----------------------------
    o_ref[...] = (jnp.dot(fc1, wf2_ref[...], preferred_element_type=f32)
                  + bf2_ref[...])


def _padded_f32_bytes(shape):
    """f32 VMEM footprint of `shape` including (8,128) tile padding."""
    s = (1, 1) + tuple(int(d) for d in shape)
    lead = 1
    for d in s[:-2]:
        lead *= d
    rows = -(-s[-2] // 8) * 8
    cols = -(-s[-1] // 128) * 128
    return lead * rows * cols * 4


def _pick_batch_tile(B):
    """Batch tile with multiple-of-8 rows when possible (legal block shapes)."""
    for cand in (128, 64, 32, 16, 8):
        if B % cand == 0:
            return cand
    return B  # small / odd batch: single tile (block == full array is legal)


def simple_cnn_forward(x, params):
    """x: (B, input_length) float32; params: torch-shaped parameter tuple."""
    conv1_w, conv1_b, conv2_w, conv2_b, fc1_w, fc1_b, fc2_w, fc2_b = params
    B, L = x.shape
    assert L % 4 == 0, "kernel is specialized to input_length % 4 == 0"
    L2, L4 = L // 2, L // 4
    num_classes = fc2_w.shape[0]
    Cp = -(-num_classes // 128) * 128          # lane-dense padded class dim
    f32 = jnp.float32

    # Glue (runs once under jit): repack weights into per-tap / per-chunk /
    # lane-dense layouts.
    x_rows = x.reshape(B * L, 1).astype(f32)                  # row = b*L + l
    w1k = conv1_w[:, 0, :].T.astype(f32)                      # (3, 16)      [k, o]
    b1k = conv1_b.reshape(1, -1).astype(f32)                  # (1, 16)
    w2k = jnp.transpose(conv2_w, (2, 1, 0)).astype(f32)       # (3, 16, 32)  [k, i, o]
    b2k = conv2_b.reshape(1, -1).astype(f32)                  # (1, 32)
    wf1k = (fc1_w.reshape(64, 32, L4).transpose(2, 1, 0)
            .astype(f32))                                     # (L4, 32, 64) [m, c, o]
    bf1k = fc1_b.reshape(1, -1).astype(f32)                   # (1, 64)
    wf2k = jnp.zeros((64, Cp), f32).at[:, :num_classes].set(fc2_w.T.astype(f32))
    bf2k = jnp.zeros((1, Cp), f32).at[:, :num_classes].set(fc2_b.astype(f32))

    Bt = _pick_batch_tile(B)
    nb = B // Bt
    # TODO(synk): cast conv2/fc matmul operands (and h1/h2 scratch) to bf16 on
    # v6e/v7x once the batch tile is large enough for MXU rate / VMEM to matter.

    args = (x_rows, w1k, b1k, w2k, b2k, wf1k, bf1k, wf2k, bf2k)

    def _const_spec(shape):
        nd = len(shape)
        return pl.BlockSpec(shape, lambda i, _nd=nd: (0,) * _nd)

    in_specs = [pl.BlockSpec((Bt * L, 1), lambda i: (i, 0))]
    in_specs += [_const_spec(a.shape) for a in args[1:]]
    out_spec = pl.BlockSpec((Bt, Cp), lambda i: (i, 0))

    # Scoped-VMEM budget from the *lane-padded* footprint (1-/16-/32-lane f32
    # blocks each occupy full 128-lane tiles in VMEM; inputs double-buffered).
    est = (2 * sum(_padded_f32_bytes(s) for s in
                   [(Bt * L, 1), w1k.shape, b1k.shape, w2k.shape, b2k.shape,
                    wf1k.shape, bf1k.shape, wf2k.shape, bf2k.shape])
           + 2 * _padded_f32_bytes((Bt, Cp))
           + _padded_f32_bytes((Bt * L, 16))
           + _padded_f32_bytes((Bt * L2, 32)))
    vmem_limit = int(min(max(est + (2 << 20), 16 << 20), 64 << 20))

    kernel = functools.partial(simple_cnn_kernel, Bt=Bt, L=L, L2=L2, L4=L4)
    out_padded = pl.pallas_call(
        kernel,
        out_shape=jax.ShapeDtypeStruct((B, Cp), f32),
        grid=(nb,),
        in_specs=in_specs,
        out_specs=out_spec,
        scratch_shapes=[pltpu.VMEM((Bt * L, 16), f32),
                        pltpu.VMEM((Bt * L2, 32), f32)],
        compiler_params=pltpu.CompilerParams(
            dimension_semantics=("parallel",),
            vmem_limit_bytes=vmem_limit),
    )(*args)
    return out_padded[:, :num_classes]


def reference_forward(x, params):
    """Pure-JAX replica of the PyTorch forward, for validation."""
    conv1_w, conv1_b, conv2_w, conv2_b, fc1_w, fc1_b, fc2_w, fc2_b = params
    B, L = x.shape

    def conv1d(h, w, bias):
        hp = jnp.pad(h, ((0, 0), (0, 0), (1, 1)))
        out = jnp.zeros((h.shape[0], w.shape[0], h.shape[2]), jnp.float32)
        for k in range(3):
            out = out + jnp.einsum('bil,oi->bol', hp[:, :, k:k + h.shape[2]], w[:, :, k])
        return out + bias[None, :, None]

    h = jax.nn.relu(conv1d(x[:, None, :], conv1_w, conv1_b))
    h = jnp.max(h.reshape(B, 16, L // 2, 2), axis=-1)
    h = jax.nn.relu(conv1d(h, conv2_w, conv2_b))
    h = jnp.max(h.reshape(B, 32, L // 4, 2), axis=-1)
    h = h.reshape(B, -1)
    h = jax.nn.relu(h @ fc1_w.T + fc1_b)
    return h @ fc2_w.T + fc2_b


def init_params(key, input_length, num_classes=3):
    L4 = input_length // 4
    ks = jax.random.split(key, 8)

    def u(k, shape, fan_in):
        bound = 1.0 / jnp.sqrt(fan_in)
        return jax.random.uniform(k, shape, jnp.float32, -bound, bound)

    conv1_w = u(ks[0], (16, 1, 3), 1 * 3)
    conv1_b = u(ks[1], (16,), 1 * 3)
    conv2_w = u(ks[2], (32, 16, 3), 16 * 3)
    conv2_b = u(ks[3], (32,), 16 * 3)
    fc1_w = u(ks[4], (64, 32 * L4), 32 * L4)
    fc1_b = u(ks[5], (64,), 32 * L4)
    fc2_w = u(ks[6], (num_classes, 64), 64)
    fc2_b = u(ks[7], (num_classes,), 64)
    return (conv1_w, conv1_b, conv2_w, conv2_b, fc1_w, fc1_b, fc2_w, fc2_b)


if __name__ == "__main__":
    key = jax.random.PRNGKey(0)
    k_x, k_p = jax.random.split(key)

    B, L = 2, 16  # input_length=16 -> fc_input_dim = 32 * 4 = 128
    x = jax.random.normal(k_x, (B, L), jnp.float32)
    params = init_params(k_p, L, num_classes=3)

    out = jax.block_until_ready(simple_cnn_forward(x, params))
    ref = jax.block_until_ready(reference_forward(x, params))

    assert out.shape == (B, 3) and out.dtype == jnp.float32
    assert jnp.allclose(out, ref, atol=1e-4, rtol=1e-4)
    print("KERNEL_OK")
</pallas_src>

<mosaic_0001>
module attributes {stable_mosaic.version = 11 : i64} {
  func.func @simple_cnn_kernel(%arg0: i32, %arg1: memref<32x1xf32, #tpu.memory_space<vmem>>, %arg2: memref<3x16xf32, #tpu.memory_space<vmem>>, %arg3: memref<1x16xf32, #tpu.memory_space<vmem>>, %arg4: memref<3x16x32xf32, #tpu.memory_space<vmem>>, %arg5: memref<1x32xf32, #tpu.memory_space<vmem>>, %arg6: memref<4x32x64xf32, #tpu.memory_space<vmem>>, %arg7: memref<1x64xf32, #tpu.memory_space<vmem>>, %arg8: memref<64x128xf32, #tpu.memory_space<vmem>>, %arg9: memref<1x128xf32, #tpu.memory_space<vmem>>, %arg10: memref<2x128xf32, #tpu.memory_space<vmem>>, %arg11: memref<32x16xf32, #tpu.memory_space<vmem>>, %arg12: memref<16x32xf32, #tpu.memory_space<vmem>>) attributes {dimension_semantics = [#tpu.dimension_semantics<parallel>], iteration_bounds = array<i64: 1>, scalar_prefetch = 0 : i64, scratch_operands = 2 : i64, tpu.core_type = #tpu.core_type<tc>, window_params = [{transform_indices = @transform_0, window_bounds = array<i64: 32, 1>}, {pipeline_mode = #tpu.pipeline_mode<synchronous>, transform_indices = @transform_1, window_bounds = array<i64: 3, 16>}, {pipeline_mode = #tpu.pipeline_mode<synchronous>, transform_indices = @transform_2, window_bounds = array<i64: 1, 16>}, {pipeline_mode = #tpu.pipeline_mode<synchronous>, transform_indices = @transform_3, window_bounds = array<i64: 3, 16, 32>}, {pipeline_mode = #tpu.pipeline_mode<synchronous>, transform_indices = @transform_4, window_bounds = array<i64: 1, 32>}, {pipeline_mode = #tpu.pipeline_mode<synchronous>, transform_indices = @transform_5, window_bounds = array<i64: 4, 32, 64>}, {pipeline_mode = #tpu.pipeline_mode<synchronous>, transform_indices = @transform_6, window_bounds = array<i64: 1, 64>}, {pipeline_mode = #tpu.pipeline_mode<synchronous>, transform_indices = @transform_7, window_bounds = array<i64: 64, 128>}, {pipeline_mode = #tpu.pipeline_mode<synchronous>, transform_indices = @transform_8, window_bounds = array<i64: 1, 128>}, {transform_indices = @transform_9, window_bounds = array<i64: 2, 128>}]} {
    %c0 = arith.constant 0 : index
    %c0_0 = arith.constant 0 : index
    %0 = vector.load %arg1[%c0, %c0_0] : memref<32x1xf32, #tpu.memory_space<vmem>>, vector<32x1xf32>
    %c0_1 = arith.constant 0 : index
    %c0_2 = arith.constant 0 : index
    %1 = vector.load %arg2[%c0_1, %c0_2] : memref<3x16xf32, #tpu.memory_space<vmem>>, vector<3x16xf32>
    %c1_i32 = arith.constant 1 : i32
    %2 = tpu.dynamic_rotate %0 by %c1_i32 dim 0 : vector<32x1xf32>, i32 -> vector<32x1xf32>
    %3 = tpu.iota {dimensions = array<i32: 0>} : vector<32x1xi32>
    %c16_i32 = arith.constant 16 : i32
    %c0_i32 = arith.constant 0 : i32
    %4 = arith.cmpi eq, %c16_i32, %c0_i32 : i32
    %c1_i32_3 = arith.constant 1 : i32
    %5 = arith.select %4, %c1_i32_3, %c16_i32 : i32
    %6 = vector.broadcast %5 : i32 to vector<32x1xi32>
    %7 = arith.remsi %3, %6 : vector<32x1xi32>
    %c0_i32_4 = arith.constant 0 : i32
    %8 = vector.broadcast %c0_i32_4 : i32 to vector<32x1xi32>
    %9 = arith.cmpi ne, %7, %8 : vector<32x1xi32>
    %c0_i32_5 = arith.constant 0 : i32
    %10 = vector.broadcast %c0_i32_5 : i32 to vector<32x1xi32>
    %11 = arith.cmpi slt, %7, %10 : vector<32x1xi32>
    %c0_i32_6 = arith.constant 0 : i32
    %12 = arith.cmpi slt, %5, %c0_i32_6 : i32
    %13 = vector.broadcast %12 : i1 to vector<32x1xi1>
    %14 = vector.broadcast %13 : vector<32x1xi1> to vector<32x1xi1>
    %15 = arith.xori %11, %14 : vector<32x1xi1>
    %16 = arith.andi %15, %9 : vector<32x1xi1>
    %17 = vector.broadcast %5 : i32 to vector<32x1xi32>
    %18 = arith.addi %7, %17 : vector<32x1xi32>
    %19 = arith.select %16, %18, %7 : vector<32x1xi1>, vector<32x1xi32>
    %c0_i32_7 = arith.constant 0 : i32
    %20 = vector.broadcast %c0_i32_7 : i32 to vector<32x1xi32>
    %21 = arith.cmpi ne, %19, %20 : vector<32x1xi32>
    %cst = arith.constant 0.000000e+00 : f32
    %22 = vector.broadcast %cst : f32 to vector<32x1xf32>
    %23 = arith.select %21, %2, %22 : vector<32x1xi1>, vector<32x1xf32>
    %24 = vector.extract_strided_slice %1 {offsets = [0, 0], sizes = [1, 16], strides = [1, 1]} : vector<3x16xf32> to vector<1x16xf32>
    %25 = vector.broadcast %23 : vector<32x1xf32> to vector<32x16xf32>
    %26 = vector.broadcast %24 : vector<1x16xf32> to vector<32x16xf32>
    %27 = arith.mulf %25, %26 : vector<32x16xf32>
    %28 = vector.extract_strided_slice %1 {offsets = [1, 0], sizes = [1, 16], strides = [1, 1]} : vector<3x16xf32> to vector<1x16xf32>
    %29 = vector.broadcast %0 : vector<32x1xf32> to vector<32x16xf32>
    %30 = vector.broadcast %28 : vector<1x16xf32> to vector<32x16xf32>
    %31 = arith.mulf %29, %30 : vector<32x16xf32>
    %32 = arith.addf %27, %31 : vector<32x16xf32>
    %c31_i32 = arith.constant 31 : i32
    %33 = tpu.dynamic_rotate %0 by %c31_i32 dim 0 : vector<32x1xf32>, i32 -> vector<32x1xf32>
    %34 = tpu.iota {dimensions = array<i32: 0>} : vector<32x1xi32>
    %c16_i32_8 = arith.constant 16 : i32
    %c0_i32_9 = arith.constant 0 : i32
    %35 = arith.cmpi eq, %c16_i32_8, %c0_i32_9 : i32
    %c1_i32_10 = arith.constant 1 : i32
    %36 = arith.select %35, %c1_i32_10, %c16_i32_8 : i32
    %37 = vector.broadcast %36 : i32 to vector<32x1xi32>
    %38 = arith.remsi %34, %37 : vector<32x1xi32>
    %c0_i32_11 = arith.constant 0 : i32
    %39 = vector.broadcast %c0_i32_11 : i32 to vector<32x1xi32>
    %40 = arith.cmpi ne, %38, %39 : vector<32x1xi32>
    %c0_i32_12 = arith.constant 0 : i32
    %41 = vector.broadcast %c0_i32_12 : i32 to vector<32x1xi32>
    %42 = arith.cmpi slt, %38, %41 : vector<32x1xi32>
    %c0_i32_13 = arith.constant 0 : i32
    %43 = arith.cmpi slt, %36, %c0_i32_13 : i32
    %44 = vector.broadcast %43 : i1 to vector<32x1xi1>
    %45 = vector.broadcast %44 : vector<32x1xi1> to vector<32x1xi1>
    %46 = arith.xori %42, %45 : vector<32x1xi1>
    %47 = arith.andi %46, %40 : vector<32x1xi1>
    %48 = vector.broadcast %36 : i32 to vector<32x1xi32>
    %49 = arith.addi %38, %48 : vector<32x1xi32>
    %50 = arith.select %47, %49, %38 : vector<32x1xi1>, vector<32x1xi32>
    %c15_i32 = arith.constant 15 : i32
    %51 = vector.broadcast %c15_i32 : i32 to vector<32x1xi32>
    %52 = arith.cmpi ne, %50, %51 : vector<32x1xi32>
    %cst_14 = arith.constant 0.000000e+00 : f32
    %53 = vector.broadcast %cst_14 : f32 to vector<32x1xf32>
    %54 = arith.select %52, %33, %53 : vector<32x1xi1>, vector<32x1xf32>
    %55 = vector.extract_strided_slice %1 {offsets = [2, 0], sizes = [1, 16], strides = [1, 1]} : vector<3x16xf32> to vector<1x16xf32>
    %56 = vector.broadcast %54 : vector<32x1xf32> to vector<32x16xf32>
    %57 = vector.broadcast %55 : vector<1x16xf32> to vector<32x16xf32>
    %58 = arith.mulf %56, %57 : vector<32x16xf32>
    %59 = arith.addf %32, %58 : vector<32x16xf32>
    %c0_15 = arith.constant 0 : index
    %c0_16 = arith.constant 0 : index
    %60 = vector.load %arg3[%c0_15, %c0_16] : memref<1x16xf32, #tpu.memory_space<vmem>>, vector<1x16xf32>
    %61 = vector.broadcast %60 : vector<1x16xf32> to vector<32x16xf32>
    %62 = arith.addf %59, %61 : vector<32x16xf32>
    %cst_17 = arith.constant 0.000000e+00 : f32
    %63 = vector.broadcast %cst_17 : f32 to vector<32x16xf32>
    %64 = arith.maximumf %62, %63 : vector<32x16xf32>
    %c0_18 = arith.constant 0 : index
    %c0_19 = arith.constant 0 : index
    %65 = vector.load %arg11[%c0_18, %c0_19] : memref<32x16xf32, #tpu.memory_space<vmem>>, vector<32x16xf32>
    tpu.vector_store %arg11[%c0_18, %c0_19], %64 {strides = array<i32>} : memref<32x16xf32, #tpu.memory_space<vmem>>, vector<32x16xf32>,
    %c0_20 = arith.constant 0 : index
    %c0_21 = arith.constant 0 : index
    %66 = tpu.strided_load %arg11[%c0_20, %c0_21] {strides = array<i32: 2, 1>} : memref<32x16xf32, #tpu.memory_space<vmem>>, vector<16x16xf32>
    %c1 = arith.constant 1 : index
    %c0_22 = arith.constant 0 : index
    %67 = tpu.strided_load %arg11[%c1, %c0_22] {strides = array<i32: 2, 1>} : memref<32x16xf32, #tpu.memory_space<vmem>>, vector<16x16xf32>
    %68 = arith.maximumf %66, %67 : vector<16x16xf32>
    %c1_i32_23 = arith.constant 1 : i32
    %69 = tpu.dynamic_rotate %68 by %c1_i32_23 dim 0 : vector<16x16xf32>, i32 -> vector<16x16xf32>
    %70 = tpu.iota {dimensions = array<i32: 0>} : vector<16x16xi32>
    %c8_i32 = arith.constant 8 : i32
    %c0_i32_24 = arith.constant 0 : i32
    %71 = arith.cmpi eq, %c8_i32, %c0_i32_24 : i32
    %c1_i32_25 = arith.constant 1 : i32
    %72 = arith.select %71, %c1_i32_25, %c8_i32 : i32
    %73 = vector.broadcast %72 : i32 to vector<16x16xi32>
    %74 = arith.remsi %70, %73 : vector<16x16xi32>
    %c0_i32_26 = arith.constant 0 : i32
    %75 = vector.broadcast %c0_i32_26 : i32 to vector<16x16xi32>
    %76 = arith.cmpi ne, %74, %75 : vector<16x16xi32>
    %c0_i32_27 = arith.constant 0 : i32
    %77 = vector.broadcast %c0_i32_27 : i32 to vector<16x16xi32>
    %78 = arith.cmpi slt, %74, %77 : vector<16x16xi32>
    %c0_i32_28 = arith.constant 0 : i32
    %79 = arith.cmpi slt, %72, %c0_i32_28 : i32
    %80 = vector.broadcast %79 : i1 to vector<16x16xi1>
    %81 = vector.broadcast %80 : vector<16x16xi1> to vector<16x16xi1>
    %82 = arith.xori %78, %81 : vector<16x16xi1>
    %83 = arith.andi %82, %76 : vector<16x16xi1>
    %84 = vector.broadcast %72 : i32 to vector<16x16xi32>
    %85 = arith.addi %74, %84 : vector<16x16xi32>
    %86 = arith.select %83, %85, %74 : vector<16x16xi1>, vector<16x16xi32>
    %c0_i32_29 = arith.constant 0 : i32
    %87 = vector.broadcast %c0_i32_29 : i32 to vector<16x16xi32>
    %88 = arith.cmpi ne, %86, %87 : vector<16x16xi32>
    %cst_30 = arith.constant 0.000000e+00 : f32
    %89 = vector.broadcast %cst_30 : f32 to vector<16x16xf32>
    %90 = arith.select %88, %69, %89 : vector<16x16xi1>, vector<16x16xf32>
    %c0_31 = arith.constant 0 : index
    %c0_32 = arith.constant 0 : index
    %c0_33 = arith.constant 0 : index
    %91 = vector.load %arg4[%c0_31, %c0_32, %c0_33] : memref<3x16x32xf32, #tpu.memory_space<vmem>>, vector<1x16x32xf32>
    %92 = vector.shape_cast %91 : vector<1x16x32xf32> to vector<16x32xf32>
    %cst_34 = arith.constant dense<0.000000e+00> : vector<16x32xf32>
    %93 = tpu.matmul %90, %92, %cst_34 {dimension_numbers = #tpu.dot_dimension_numbers<[1], [0], [0], [1], [0, 0, 1, 1], [], []>} : vector<16x16xf32>, vector<16x32xf32>, vector<16x32xf32> -> vector<16x32xf32>
    %c1_35 = arith.constant 1 : index
    %c0_36 = arith.constant 0 : index
    %c0_37 = arith.constant 0 : index
    %94 = vector.load %arg4[%c1_35, %c0_36, %c0_37] : memref<3x16x32xf32, #tpu.memory_space<vmem>>, vector<1x16x32xf32>
    %95 = vector.shape_cast %94 : vector<1x16x32xf32> to vector<16x32xf32>
    %cst_38 = arith.constant dense<0.000000e+00> : vector<16x32xf32>
    %96 = tpu.matmul %68, %95, %cst_38 {dimension_numbers = #tpu.dot_dimension_numbers<[1], [0], [0], [1], [0, 0, 1, 1], [], []>} : vector<16x16xf32>, vector<16x32xf32>, vector<16x32xf32> -> vector<16x32xf32>
    %97 = arith.addf %93, %96 : vector<16x32xf32>
    %c15_i32_39 = arith.constant 15 : i32
    %98 = tpu.dynamic_rotate %68 by %c15_i32_39 dim 0 : vector<16x16xf32>, i32 -> vector<16x16xf32>
    %99 = tpu.iota {dimensions = array<i32: 0>} : vector<16x16xi32>
    %c8_i32_40 = arith.constant 8 : i32
    %c0_i32_41 = arith.constant 0 : i32
    %100 = arith.cmpi eq, %c8_i32_40, %c0_i32_41 : i32
    %c1_i32_42 = arith.constant 1 : i32
    %101 = arith.select %100, %c1_i32_42, %c8_i32_40 : i32
    %102 = vector.broadcast %101 : i32 to vector<16x16xi32>
    %103 = arith.remsi %99, %102 : vector<16x16xi32>
    %c0_i32_43 = arith.constant 0 : i32
    %104 = vector.broadcast %c0_i32_43 : i32 to vector<16x16xi32>
    %105 = arith.cmpi ne, %103, %104 : vector<16x16xi32>
    %c0_i32_44 = arith.constant 0 : i32
    %106 = vector.broadcast %c0_i32_44 : i32 to vector<16x16xi32>
    %107 = arith.cmpi slt, %103, %106 : vector<16x16xi32>
    %c0_i32_45 = arith.constant 0 : i32
    %108 = arith.cmpi slt, %101, %c0_i32_45 : i32
    %109 = vector.broadcast %108 : i1 to vector<16x16xi1>
    %110 = vector.broadcast %109 : vector<16x16xi1> to vector<16x16xi1>
    %111 = arith.xori %107, %110 : vector<16x16xi1>
    %112 = arith.andi %111, %105 : vector<16x16xi1>
    %113 = vector.broadcast %101 : i32 to vector<16x16xi32>
    %114 = arith.addi %103, %113 : vector<16x16xi32>
    %115 = arith.select %112, %114, %103 : vector<16x16xi1>, vector<16x16xi32>
    %c7_i32 = arith.constant 7 : i32
    %116 = vector.broadcast %c7_i32 : i32 to vector<16x16xi32>
    %117 = arith.cmpi ne, %115, %116 : vector<16x16xi32>
    %cst_46 = arith.constant 0.000000e+00 : f32
    %118 = vector.broadcast %cst_46 : f32 to vector<16x16xf32>
    %119 = arith.select %117, %98, %118 : vector<16x16xi1>, vector<16x16xf32>
    %c2 = arith.constant 2 : index
    %c0_47 = arith.constant 0 : index
    %c0_48 = arith.constant 0 : index
    %120 = vector.load %arg4[%c2, %c0_47, %c0_48] : memref<3x16x32xf32, #tpu.memory_space<vmem>>, vector<1x16x32xf32>
    %121 = vector.shape_cast %120 : vector<1x16x32xf32> to vector<16x32xf32>
    %cst_49 = arith.constant dense<0.000000e+00> : vector<16x32xf32>
    %122 = tpu.matmul %119, %121, %cst_49 {dimension_numbers = #tpu.dot_dimension_numbers<[1], [0], [0], [1], [0, 0, 1, 1], [], []>} : vector<16x16xf32>, vector<16x32xf32>, vector<16x32xf32> -> vector<16x32xf32>
    %123 = arith.addf %97, %122 : vector<16x32xf32>
    %c0_50 = arith.constant 0 : index
    %c0_51 = arith.constant 0 : index
    %124 = vector.load %arg5[%c0_50, %c0_51] : memref<1x32xf32, #tpu.memory_space<vmem>>, vector<1x32xf32>
    %125 = vector.broadcast %124 : vector<1x32xf32> to vector<16x32xf32>
    %126 = arith.addf %123, %125 : vector<16x32xf32>
    %cst_52 = arith.constant 0.000000e+00 : f32
    %127 = vector.broadcast %cst_52 : f32 to vector<16x32xf32>
    %128 = arith.maximumf %126, %127 : vector<16x32xf32>
    %c0_53 = arith.constant 0 : index
    %c0_54 = arith.constant 0 : index
    %129 = vector.load %arg12[%c0_53, %c0_54] : memref<16x32xf32, #tpu.memory_space<vmem>>, vector<16x32xf32>
    tpu.vector_store %arg12[%c0_53, %c0_54], %128 {strides = array<i32>} : memref<16x32xf32, #tpu.memory_space<vmem>>, vector<16x32xf32>,
    %cst_55 = arith.constant 0.000000e+00 : f32
    %130 = vector.broadcast %cst_55 : f32 to vector<2x64xf32>
    %c0_56 = arith.constant 0 : index
    %c0_57 = arith.constant 0 : index
    %131 = tpu.strided_load %arg12[%c0_56, %c0_57] {strides = array<i32: 8, 1>} : memref<16x32xf32, #tpu.memory_space<vmem>>, vector<2x32xf32>
    %c1_58 = arith.constant 1 : index
    %c0_59 = arith.constant 0 : index
    %132 = tpu.strided_load %arg12[%c1_58, %c0_59] {strides = array<i32: 8, 1>} : memref<16x32xf32, #tpu.memory_space<vmem>>, vector<2x32xf32>
    %133 = arith.maximumf %131, %132 : vector<2x32xf32>
    %c0_60 = arith.constant 0 : index
    %c0_61 = arith.constant 0 : index
    %c0_62 = arith.constant 0 : index
    %134 = vector.load %arg6[%c0_60, %c0_61, %c0_62] : memref<4x32x64xf32, #tpu.memory_space<vmem>>, vector<1x32x64xf32>
    %135 = vector.shape_cast %134 : vector<1x32x64xf32> to vector<32x64xf32>
    %cst_63 = arith.constant dense<0.000000e+00> : vector<2x64xf32>
    %136 = tpu.matmul %133, %135, %cst_63 {dimension_numbers = #tpu.dot_dimension_numbers<[1], [0], [0], [1], [0, 0, 1, 1], [], []>} : vector<2x32xf32>, vector<32x64xf32>, vector<2x64xf32> -> vector<2x64xf32>
    %137 = arith.addf %130, %136 : vector<2x64xf32>
    %c2_64 = arith.constant 2 : index
    %c0_65 = arith.constant 0 : index
    %138 = tpu.strided_load %arg12[%c2_64, %c0_65] {strides = array<i32: 8, 1>} : memref<16x32xf32, #tpu.memory_space<vmem>>, vector<2x32xf32>
    %c3 = arith.constant 3 : index
    %c0_66 = arith.constant 0 : index
    %139 = tpu.strided_load %arg12[%c3, %c0_66] {strides = array<i32: 8, 1>} : memref<16x32xf32, #tpu.memory_space<vmem>>, vector<2x32xf32>
    %140 = arith.maximumf %138, %139 : vector<2x32xf32>
    %c1_67 = arith.constant 1 : index
    %c0_68 = arith.constant 0 : index
    %c0_69 = arith.constant 0 : index
    %141 = vector.load %arg6[%c1_67, %c0_68, %c0_69] : memref<4x32x64xf32, #tpu.memory_space<vmem>>, vector<1x32x64xf32>
    %142 = vector.shape_cast %141 : vector<1x32x64xf32> to vector<32x64xf32>
    %cst_70 = arith.constant dense<0.000000e+00> : vector<2x64xf32>
    %143 = tpu.matmul %140, %142, %cst_70 {dimension_numbers = #tpu.dot_dimension_numbers<[1], [0], [0], [1], [0, 0, 1, 1], [], []>} : vector<2x32xf32>, vector<32x64xf32>, vector<2x64xf32> -> vector<2x64xf32>
    %144 = arith.addf %137, %143 : vector<2x64xf32>
    %c4 = arith.constant 4 : index
    %c0_71 = arith.constant 0 : index
    %145 = tpu.strided_load %arg12[%c4, %c0_71] {strides = array<i32: 8, 1>} : memref<16x32xf32, #tpu.memory_space<vmem>>, vector<2x32xf32>
    %c5 = arith.constant 5 : index
    %c0_72 = arith.constant 0 : index
    %146 = tpu.strided_load %arg12[%c5, %c0_72] {strides = array<i32: 8, 1>} : memref<16x32xf32, #tpu.memory_space<vmem>>, vector<2x32xf32>
    %147 = arith.maximumf %145, %146 : vector<2x32xf32>
    %c2_73 = arith.constant 2 : index
    %c0_74 = arith.constant 0 : index
    %c0_75 = arith.constant 0 : index
    %148 = vector.load %arg6[%c2_73, %c0_74, %c0_75] : memref<4x32x64xf32, #tpu.memory_space<vmem>>, vector<1x32x64xf32>
    %149 = vector.shape_cast %148 : vector<1x32x64xf32> to vector<32x64xf32>
    %cst_76 = arith.constant dense<0.000000e+00> : vector<2x64xf32>
    %150 = tpu.matmul %147, %149, %cst_76 {dimension_numbers = #tpu.dot_dimension_numbers<[1], [0], [0], [1], [0, 0, 1, 1], [], []>} : vector<2x32xf32>, vector<32x64xf32>, vector<2x64xf32> -> vector<2x64xf32>
    %151 = arith.addf %144, %150 : vector<2x64xf32>
    %c6 = arith.constant 6 : index
    %c0_77 = arith.constant 0 : index
    %152 = tpu.strided_load %arg12[%c6, %c0_77] {strides = array<i32: 8, 1>} : memref<16x32xf32, #tpu.memory_space<vmem>>, vector<2x32xf32>
    %c7 = arith.constant 7 : index
    %c0_78 = arith.constant 0 : index
    %153 = tpu.strided_load %arg12[%c7, %c0_78] {strides = array<i32: 8, 1>} : memref<16x32xf32, #tpu.memory_space<vmem>>, vector<2x32xf32>
    %154 = arith.maximumf %152, %153 : vector<2x32xf32>
    %c3_79 = arith.constant 3 : index
    %c0_80 = arith.constant 0 : index
    %c0_81 = arith.constant 0 : index
    %155 = vector.load %arg6[%c3_79, %c0_80, %c0_81] : memref<4x32x64xf32, #tpu.memory_space<vmem>>, vector<1x32x64xf32>
    %156 = vector.shape_cast %155 : vector<1x32x64xf32> to vector<32x64xf32>
    %cst_82 = arith.constant dense<0.000000e+00> : vector<2x64xf32>
    %157 = tpu.matmul %154, %156, %cst_82 {dimension_numbers = #tpu.dot_dimension_numbers<[1], [0], [0], [1], [0, 0, 1, 1], [], []>} : vector<2x32xf32>, vector<32x64xf32>, vector<2x64xf32> -> vector<2x64xf32>
    %158 = arith.addf %151, %157 : vector<2x64xf32>
    %c0_83 = arith.constant 0 : index
    %c0_84 = arith.constant 0 : index
    %159 = vector.load %arg7[%c0_83, %c0_84] : memref<1x64xf32, #tpu.memory_space<vmem>>, vector<1x64xf32>
    %160 = vector.broadcast %159 : vector<1x64xf32> to vector<2x64xf32>
    %161 = arith.addf %158, %160 : vector<2x64xf32>
    %cst_85 = arith.constant 0.000000e+00 : f32
    %162 = vector.broadcast %cst_85 : f32 to vector<2x64xf32>
    %163 = arith.maximumf %161, %162 : vector<2x64xf32>
    %c0_86 = arith.constant 0 : index
    %c0_87 = arith.constant 0 : index
    %164 = vector.load %arg8[%c0_86, %c0_87] : memref<64x128xf32, #tpu.memory_space<vmem>>, vector<64x128xf32>
    %cst_88 = arith.constant dense<0.000000e+00> : vector<2x128xf32>
    %165 = tpu.matmul %163, %164, %cst_88 {dimension_numbers = #tpu.dot_dimension_numbers<[1], [0], [0], [1], [0, 0, 1, 1], [], []>} : vector<2x64xf32>, vector<64x128xf32>, vector<2x128xf32> -> vector<2x128xf32>
    %c0_89 = arith.constant 0 : index
    %c0_90 = arith.constant 0 : index
    %166 = vector.load %arg9[%c0_89, %c0_90] : memref<1x128xf32, #tpu.memory_space<vmem>>, vector<1x128xf32>
    %167 = vector.broadcast %166 : vector<1x128xf32> to vector<2x128xf32>
    %168 = arith.addf %165, %167 : vector<2x128xf32>
    %c0_91 = arith.constant 0 : index
    %c0_92 = arith.constant 0 : index
    %169 = vector.load %arg10[%c0_91, %c0_92] : memref<2x128xf32, #tpu.memory_space<vmem>>, vector<2x128xf32>
    tpu.vector_store %arg10[%c0_91, %c0_92], %168 {strides = array<i32>} : memref<2x128xf32, #tpu.memory_space<vmem>>, vector<2x128xf32>,
    return
  }
  func.func @transform_0(%arg0: i32) -> (i32, i32) {
    %c0_i32 = arith.constant 0 : i32
    %c0_i32_0 = arith.constant 0 : i32
    return %arg0, %c0_i32 : i32, i32
  }
  func.func @transform_1(%arg0: i32) -> (i32, i32) {
    %c0_i32 = arith.constant 0 : i32
    %c0_i32_0 = arith.constant 0 : i32
    %c0_i32_1 = arith.constant 0 : i32
    return %c0_i32, %c0_i32_0 : i32, i32
  }
  func.func @transform_2(%arg0: i32) -> (i32, i32) {
    %c0_i32 = arith.constant 0 : i32
    %c0_i32_0 = arith.constant 0 : i32
    %c0_i32_1 = arith.constant 0 : i32
    return %c0_i32, %c0_i32_0 : i32, i32
  }
  func.func @transform_3(%arg0: i32) -> (i32, i32, i32) {
    %c0_i32 = arith.constant 0 : i32
    %c0_i32_0 = arith.constant 0 : i32
    %c0_i32_1 = arith.constant 0 : i32
    %c0_i32_2 = arith.constant 0 : i32
    return %c0_i32, %c0_i32_0, %c0_i32_1 : i32, i32, i32
  }
  func.func @transform_4(%arg0: i32) -> (i32, i32) {
    %c0_i32 = arith.constant 0 : i32
    %c0_i32_0 = arith.constant 0 : i32
    %c0_i32_1 = arith.constant 0 : i32
    return %c0_i32, %c0_i32_0 : i32, i32
  }
  func.func @transform_5(%arg0: i32) -> (i32, i32, i32) {
    %c0_i32 = arith.constant 0 : i32
    %c0_i32_0 = arith.constant 0 : i32
    %c0_i32_1 = arith.constant 0 : i32
    %c0_i32_2 = arith.constant 0 : i32
    return %c0_i32, %c0_i32_0, %c0_i32_1 : i32, i32, i32
  }
  func.func @transform_6(%arg0: i32) -> (i32, i32) {
    %c0_i32 = arith.constant 0 : i32
    %c0_i32_0 = arith.constant 0 : i32
    %c0_i32_1 = arith.constant 0 : i32
    return %c0_i32, %c0_i32_0 : i32, i32
  }
  func.func @transform_7(%arg0: i32) -> (i32, i32) {
    %c0_i32 = arith.constant 0 : i32
    %c0_i32_0 = arith.constant 0 : i32
    %c0_i32_1 = arith.constant 0 : i32
    return %c0_i32, %c0_i32_0 : i32, i32
  }
  func.func @transform_8(%arg0: i32) -> (i32, i32) {
    %c0_i32 = arith.constant 0 : i32
    %c0_i32_0 = arith.constant 0 : i32
    %c0_i32_1 = arith.constant 0 : i32
    return %c0_i32, %c0_i32_0 : i32, i32
  }
  func.func @transform_9(%arg0: i32) -> (i32, i32) {
    %c0_i32 = arith.constant 0 : i32
    %c0_i32_0 = arith.constant 0 : i32
    return %arg0, %c0_i32 : i32, i32
  }
}

</mosaic_0001>

<bundles_post_ra>
// kernel: tpu_custom_call.1
= control target key start
LH: loop header
LB: loop body
LE: loop exit
PB: predicated region body
PF: predicated region fallthrough
CT: control target
= control target key end

     0   :  { %14 = vsyncpa [#allocation5], 0  ;;  %s1573_s0 = inlined_call_operand.vmem [shape: f32[32,1], index: 0, kind: input, shape index: {}]   ;;  %s1574_s1 = inlined_call_operand.vmem [shape: f32[3,16], index: 1, kind: input, shape index: {}]   ;;  %s1575_s2 = inlined_call_operand.vmem [shape: f32[1,16], index: 2, kind: input, shape index: {}]   ;;  %s1576_s3 = inlined_call_operand.hbm [shape: f32[3,16,32], index: 3, kind: input, shape index: {}]   ;;  %s1577_s4 = inlined_call_operand.vmem [shape: f32[1,32], index: 4, kind: input, shape index: {}]   ;;  %s1578_s5 = inlined_call_operand.hbm [shape: f32[4,32,64], index: 5, kind: input, shape index: {}]   ;;  %s1579_s6 = inlined_call_operand.vmem [shape: f32[1,64], index: 6, kind: input, shape index: {}]   ;;  %s1580_s7 = inlined_call_operand.hbm [shape: f32[64,128], index: 7, kind: input, shape index: {}]   ;;  %s1581_s8 = inlined_call_operand.vmem [shape: f32[1,128], index: 8, kind: input, shape index: {}]   ;;  %s1582_s9 = inlined_call_operand.hbm [shape: f32[2,128], index: 9, kind: output, shape index: {}]  }
   0x1   :  { %15 = vsyncpa [#allocation8], 0 }
   0x2   :  { %16 = vsyncpa [#allocation6], 0  ;;  %s1339_s30 = smov [#allocation7]   ;;  %s1340_s11 = smov [#allocation4]  }
   0x3   :  { %s42_s10 = sshll.u32 %s1339_s30, 4  ;;  %s28_s12 = sshll.u32 %s1340_s11, 4  ;;  %s43_s10 = int_to_ptr.vmem [resolvable:$true] %s42_s10  ;;  %s1399_s12 = int_to_ptr.vmem [resolvable:$true] %s28_s12 }
   0x4   :  { %s1245_s15 = scalar_lea.hbm %s1578_s5, 2048 }
   0x5   :  { %p1246_p0 = scmp.ne.s32.totalorder %s1578_s5, %s1245_s15  ;;  %p1249_p1 = scmp.lt.u32.totalorder %s1245_s15, %s1578_s5 }
   0x7   :  { %p1251_p2 = pnand %p1249_p1, %p1246_p0 }
   0x9   :  { %1254 = shalt.err (!%p1251_p2)
}
   0xa   :  { %s1255_s20 = scalar_lea.vmem %s43_s10, 2048  ;;  %p1260_p4 = scmp.lt.s32.totalorder %s43_s10, %s43_s10 }
   0xb   :  { %p1256_p3 = scmp.ne.s32.totalorder %s43_s10, %s1255_s20  ;;  %p1261_p5 = scmp.lt.s32.totalorder %s1255_s20, %s1255_s20 }
   0xd   :  { %p1262_p6 = por %p1261_p5, %p1260_p4 }
   0xf   :  { %p1263_p7 = pnand %p1262_p6, %p1256_p3 }
  0x11   :  { %1266 = shalt.err (!%p1263_p7)
}
  0x12   :  { %s1341_s21 = smov 128   ;;  %s1342_s22 = smov 8  }
  0x13   :  { %48 = dma.hbm_to_vmem [thread:$0]  %s1578_s5, 2048, %s43_s10, [#allocation8], %s1341_s21, %s1341_s21, %s1342_s22  }
  0x14   :  { %s1267_s27 = scalar_lea.hbm %s1576_s3, 768 }
  0x15   :  { %p1268_p8 = scmp.ne.s32.totalorder %s1576_s3, %s1267_s27  ;;  %p1271_p9 = scmp.lt.u32.totalorder %s1267_s27, %s1576_s3 }
  0x17   :  { %p1273_p10 = pnand %p1271_p9, %p1268_p8 }
  0x19   :  { %1276 = shalt.err (!%p1273_p10)
}
  0x1a   :  { %s1277_s13 = scalar_lea.vmem %s1399_s12, 768  ;;  %p1282_p12 = scmp.lt.s32.totalorder %s1399_s12, %s1399_s12 }
  0x1b   :  { %p1278_p11 = scmp.ne.s32.totalorder %s1399_s12, %s1277_s13  ;;  %p1283_p13 = scmp.lt.s32.totalorder %s1277_s13, %s1277_s13 }
  0x1d   :  { %p1284_p0 = por %p1283_p13, %p1282_p12 }
  0x1f   :  { %p1285_p1 = pnand %p1284_p0, %p1278_p11 }
  0x21   :  { %1288 = shalt.err (!%p1285_p1)
}
  0x22   :  { %34 = dma.hbm_to_vmem [thread:$0]  %s1576_s3, 768, %s1399_s12, [#allocation5], %s1341_s21, %s1341_s21, %s1342_s22  }
  0x23   :  { %s1343_s14 = smov [#allocation9]   ;;  %s1289_s18 = scalar_lea.hbm %s1580_s7, 1024 }
  0x24   :  { %s56_s15 = sshll.u32 %s1343_s14, 4  ;;  %p1290_p2 = scmp.ne.s32.totalorder %s1580_s7, %s1289_s18  ;;  %s57_s15 = int_to_ptr.vmem [resolvable:$true] %s56_s15 }
  0x25   :  { %p1293_p3 = scmp.lt.u32.totalorder %s1289_s18, %s1580_s7 }
  0x27   :  { %p1295_p4 = pnand %p1293_p3, %p1290_p2 }
  0x29   :  { %1298 = shalt.err (!%p1295_p4)
}
  0x2a   :  { %s1299_s25 = scalar_lea.vmem %s57_s15, 1024  ;;  %p1304_p6 = scmp.lt.s32.totalorder %s57_s15, %s57_s15 }
  0x2b   :  { %p1300_p5 = scmp.ne.s32.totalorder %s57_s15, %s1299_s25  ;;  %p1305_p7 = scmp.lt.s32.totalorder %s1299_s25, %s1299_s25 }
  0x2d   :  { %p1306_p8 = por %p1305_p7, %p1304_p6 }
  0x2f   :  { %p1307_p9 = pnand %p1306_p8, %p1300_p5 }
  0x31   :  { %1310 = shalt.err (!%p1307_p9)
}
  0x32   :  { %62 = dma.hbm_to_vmem [thread:$0]  %s1580_s7, 1024, %s57_s15, [#allocation8], %s1341_s21, %s1341_s21, %s1342_s22  }
  0x33   :  { %1333 = dma.done.wait [#allocation5], 768  }
  0x34   :  { %1334 = vsyncadd [#allocation5], 4294966528 }
  0x35   :  { %1335 = dma.done.wait [#allocation8], 3072  }
  0x36   :  { %1336 = vsyncadd [#allocation8], 4294964224  ;;  %v83_v0 = vlaneseq  ;;  %v1344_v1 = vmov 0   ;;  %v75_v4 = vld [vmem:[%s1573_s0 + $0x8] sm:$0xff]  ;;  %v74_v5 = vld [vmem:[%s1573_s0] sm:$0xff]  ;;  %vm273_vm6 = vcmask 130048  }
  0x37   :  { %1244 = vset.pattern.permute.xlu1 %v1344_v1  ;;  %1243 = vset.pattern.permute.xlu0 %v1344_v1  ;;  %v76_v6 = vld [vmem:[%s1573_s0 + $0x10] sm:$0xff]  ;;  %v80_v7 = vrot.slane %v75_v4, 7  ;;  %v79_v8 = vrot.slane %v74_v5, 7  ;;  %v77_v9 = vld [vmem:[%s1573_s0 + $0x18] sm:$0xff]  ;;  %v210_v17 = vrot.slane %v75_v4, 1  ;;  %v209_v24 = vrot.slane %v74_v5, 1 }
  0x38   :  { %v1451_v2 = vshrl.u32 %v83_v0, 7  ;;  %184 = vperm.xlu1 %1244, %v75_v4   ;;  %179 = vperm.xlu0 %1243, %v74_v5   ;;  %v81_v10 = vrot.slane %v76_v6, 7  ;;  %v82_v11 = vrot.slane %v77_v9, 7  ;;  %v211_v23 = vrot.slane %v76_v6, 1  ;;  %v322_v35 = vld [vmem:[#allocation4 + $0x10] sm:$0xff]  ;;  %v323_v36 = vld [vmem:[#allocation4 + $0x18] sm:$0xff] }
  0x39   :  { %v212_v29 = vrot.slane %v77_v9, 1  ;;  %v1181_v37 = vpack.c.bf16 %v323_v36, %v322_v35  ;;  %v319_v38 = vld [vmem:[#allocation4] sm:$0xff]  ;;  %v320_v39 = vld [vmem:[#allocation4 + $0x8] sm:$0xff]  ;;  %vm1346_vm11 = vmmov 0   ;;  %vm591_vm12 = vcmask 261120   ;;  %s1348_s16 = smov [#allocation10]  }
  0x3a   :  { %v91_v3 = vadd.s32 16, %v1451_v2  ;;  %vm85_vm0 = vcmp.lt.s32.totalorder %v1451_v2, 1  ;;  %v97_v12 = vand.u32 15, %v1451_v2  ;;  %v1469_v13 = vadd.s32 8, %v1451_v2  ;;  %v495_v41 = vld [vmem:[#allocation4 + $0x20] sm:$0xff]  ;;  %v496_v42 = vld [vmem:[#allocation4 + $0x28] sm:$0xff] }
  0x3b   :  { %v88_v14 = vsel %vm85_vm0, %v79_v8, %v80_v7  ;;  %v86_v16 = vsel %vm85_vm0, %v81_v10, %v82_v11  ;;  %v92_v20 = vadd.s32 24, %v1451_v2  ;;  %v87_v21 = vsel %vm85_vm0, %v80_v7, %v81_v10  ;;  %1182 = vmatprep.subr.bf16.mxu1 %v1181_v37  ;;  %v78_v50 = vld [vmem:[%s1574_s1] sm:$0x7]  ;;  %s1031_s17 = sshll.u32 %s1348_s16, 4  ;;  %s1032_s17 = int_to_ptr.vmem [resolvable:$true] %s1031_s17 }
  0x3c   :  { %v111_v15 = vand.u32 15, %v91_v3  ;;  %166 = vperm.xlu1 %1244, %v86_v16   ;;  %156 = vperm.xlu0 %1243, %v88_v14   ;;  %vm1475_vm1 = vcmp.ne.s32.totalorder %v97_v12, 0  ;;  %v104_v19 = vand.u32 15, %v1469_v13  ;;  %v89_v22 = vsel %vm85_vm0, %v82_v11, %v79_v8  ;;  %v1041_v10 = vld [vmem:[%s1575_s2] ss:$0 sm:$0xff]  ;;  %s1311_s18 = scalar_lea.vmem %s1032_s17, 32  ;;  %p1316_p11 = scmp.lt.s32.totalorder %s1032_s17, %s1032_s17 }
  0x3d   :  { %vm213_vm3 = vcmp.lt.s32.totalorder %v1451_v2, 7  ;;  %v145_v26 = vsel %vm1475_vm1, %v89_v22, 0.0  ;;  %v118_v28 = vand.u32 15, %v92_v20  ;;  %1184 = vmatpush3.bf16.msra.mxu1 %v1181_v37  ;;  %v1185_v40 = vpack.c.bf16 %v320_v39, %v319_v38  ;;  %p1312_p10 = scmp.ne.s32.totalorder %s1032_s17, %s1311_s18  ;;  %p1317_p12 = scmp.lt.s32.totalorder %s1311_s18, %s1311_s18 }
  0x3e   :  { %vm143_vm2 = vcmp.ne.s32.totalorder %v111_v15, 0  ;;  %v215_v27 = vsel %vm213_vm3, %v210_v17, %v211_v23  ;;  %vm219_vm4 = vcmp.ne.s32.totalorder %v104_v19, 15  ;;  %v216_v31 = vsel %vm213_vm3, %v209_v24, %v210_v17 }
  0x3f   :  { %v147_v25 = vsel %vm143_vm2, %v87_v21, 0.0  ;;  %v223_v30 = vsel %vm219_vm4, %v215_v27, 0.0  ;;  %v217_v32 = vsel %vm213_vm3, %v212_v29, %v209_v24  ;;  %vm221_vm5 = vcmp.ne.s32.totalorder %v118_v28, 15  ;;  %1186 = vmatprep.subr.bf16.mxu0 %v1185_v40  ;;  %p1318_p13 = por %p1317_p12, %p1316_p11 }
  0x40   :  { %194 = vperm.xlu1 %1244, %v77_v9   ;;  %189 = vperm.xlu0 %1243, %v76_v6   ;;  %v225_v33 = vsel %vm221_vm5, %v217_v32, 0.0  ;;  %v214_v34 = vsel %vm213_vm3, %v211_v23, %v212_v29  ;;  %v1496_v43 = vpack.c.bf16 %v496_v42, %v495_v41  ;;  %v171_v48 = vsub.s32 0, %v1451_v2 }
  0x41   :  { %1188 = vmatpush3.bf16.msra.mxu0 %v1185_v40  ;;  %v199_v49 = vsub.s32 1, %v1451_v2  ;;  %v248_v54 = vsub.s32 2, %v1451_v2  ;;  %vm950_vm13 = vcmask 523264   ;;  %p1319_p0 = pnand %p1318_p13, %p1312_p10 }
  0x42   :  { %1190 = vmatprep.subr.bf16.mxu0 %v1496_v43  ;;  %v172_v53 = vrot.slane %v78_v50, %v171_v48 }
  0x43   :  { %v200_v55 = vrot.slane %v78_v50, %v199_v49  ;;  %v249_v60 = vrot.slane %v78_v50, %v248_v54  ;;  %v608_v50 = vld [vmem:[#allocation7 + $0x20] sm:$0xff]  ;;  %v765_v54 = vld [vmem:[#allocation7 + $0x48] sm:$0xff] }
  0x44   :  { %161 = vperm.xlu1 %1244, %v147_v25   ;;  %151 = vperm.xlu0 %1243, %v145_v26  }
  0x48   :  { %233 = vperm.xlu1 %1244, %v223_v30   ;;  %228 = vperm.xlu0 %1243, %v216_v31  }
  0x4c   :  { %243 = vperm.xlu1 %1244, %v225_v33   ;;  %238 = vperm.xlu0 %1243, %v214_v34   ;;  %v295_v33 = vand.u32 7, %v1451_v2  ;;  %v302_v34 = vand.u32 7, %v1469_v13  ;;  %v767_v2 = vld [vmem:[#allocation7 + $0x58] sm:$0xff] }
  0x4e   :  { %vm315_vm7 = vcmp.ne.s32.totalorder %v295_v33, 0  ;;  %vm316_vm8 = vcmp.ne.s32.totalorder %v302_v34, 0  ;;  %vm490_vm9 = vcmp.ne.s32.totalorder %v295_v33, 7  ;;  %vm491_vm10 = vcmp.ne.s32.totalorder %v302_v34, 7 }
  0xb7   :  { %v185_v44 = vpop.permute.xlu1 %184  ;;  %v180_v45 = vpop.permute.xlu0 %179 }
  0xb8   :  { %v202_v61 = vmul.f32 %v200_v55, %v185_v44  ;;  %v201_v62 = vmul.f32 %v200_v55, %v180_v45 }
  0xbb   :  { %v167_v46 = vpop.permute.xlu1 %166  ;;  %v157_v47 = vpop.permute.xlu0 %156 }
  0xbc   :  { %v174_v58 = vmul.f32 %v172_v53, %v157_v47  ;;  %v176_v8 = vmul.f32 %v172_v53, %v167_v46 }
  0xbe   :  { %v206_v4 = vadd.f32 %v202_v61, %v174_v58  ;;  %v766_v58 = vld [vmem:[#allocation7 + $0x50] sm:$0xff] }
  0xbf   :  { %v195_v51 = vpop.permute.xlu1 %194  ;;  %v190_v52 = vpop.permute.xlu0 %189  ;;  %v1209_v61 = vpack.c.bf16 %v767_v2, %v766_v58 }
  0xc0   :  { %v204_v63 = vmul.f32 %v200_v55, %v195_v51  ;;  %v203_v9 = vmul.f32 %v200_v55, %v190_v52  ;;  %v609_v51 = vld [vmem:[#allocation7 + $0x28] sm:$0xff]  ;;  %v610_v55 = vld [vmem:[#allocation7 + $0x30] sm:$0xff] }
  0xc1   :  { %v1194_v52 = vpack.c.bf16 %v609_v51, %v608_v50 }
  0xc2   :  { %v208_v14 = vadd.f32 %v204_v63, %v176_v8 }
  0xc3   :  { %v162_v56 = vpop.permute.xlu1 %161  ;;  %v152_v57 = vpop.permute.xlu0 %151 }
  0xc4   :  { %v173_v59 = vmul.f32 %v172_v53, %v152_v57  ;;  %v175_v0 = vmul.f32 %v172_v53, %v162_v56  ;;  %v764_v53 = vld [vmem:[#allocation7 + $0x40] sm:$0xff]  ;;  %v1345_v56 = vmov 0.0|0.0   ;;  %v611_v57 = vld [vmem:[#allocation7 + $0x38] sm:$0xff] }
  0xc5   :  { %1193 = vmatprep.subr.bf16.mxu1 %v1345_v56 }
  0xc6   :  { %v205_v5 = vadd.f32 %v201_v62, %v173_v59  ;;  %v207_v15 = vadd.f32 %v203_v9, %v175_v0  ;;  %v1197_v59 = vpack.c.bf16 %v611_v57, %v610_v55 }
  0xc7   :  { %v234_v1 = vpop.permute.xlu1 %233  ;;  %v229_v3 = vpop.permute.xlu0 %228 }
  0xc8   :  { %v251_v6 = vmul.f32 %v249_v60, %v234_v1  ;;  %v250_v7 = vmul.f32 %v249_v60, %v229_v3  ;;  %v1048_v1 = vld [vmem:[%s1577_s4] ss:$0 sm:$0xff] }
  0xca   :  { %v255_v11 = vadd.f32 %v251_v6, %v206_v4  ;;  %v254_v12 = vadd.f32 %v250_v7, %v205_v5 }
  0xcb   :  { %v244_v16 = vpop.permute.xlu1 %243  ;;  %v239_v17 = vpop.permute.xlu0 %238 }
  0xcc   :  { %v266_v18 = vadd.f32 %v1041_v10, %v255_v11  ;;  %v265_v19 = vadd.f32 %v1041_v10, %v254_v12  ;;  %v253_v20 = vmul.f32 %v249_v60, %v244_v16  ;;  %v252_v21 = vmul.f32 %v249_v60, %v239_v17  ;;  %v599_v11 = vld [vmem:[#allocation7 + $0x8] sm:$0xff]  ;;  %v600_v12 = vld [vmem:[#allocation7 + $0x10] sm:$0xff] }
  0xcd   :  { %v1347_v60 = vmov 0.0  }
  0xce   :  { %v270_v22 = vmax.f32 %v266_v18, 0.0  ;;  %v269_v23 = vmax.f32 %v265_v19, 0.0  ;;  %v257_v24 = vadd.f32 %v253_v20, %v208_v14  ;;  %v256_v25 = vadd.f32 %v252_v21, %v207_v15  ;;  %v601_v14 = vld [vmem:[#allocation7 + $0x18] sm:$0xff] }
  0xd0   :  { %275 = vst.msk [vmem:[#allocation2 + $0x8] sm:$0xff] %vm273_vm6, %v270_v22  ;;  %274 = vst.msk [vmem:[#allocation2] sm:$0xff] %vm273_vm6, %v269_v23  ;;  %v268_v26 = vadd.f32 %v1041_v10, %v257_v24  ;;  %v267_v27 = vadd.f32 %v1041_v10, %v256_v25  ;;  %v598_v10 = vld [vmem:[#allocation7] sm:$0xff]  ;;  %v1203_v22 = vpack.c.bf16 %v601_v14, %v600_v12  ;;  %v849_v24 = vld [vmem:[#allocation7 + $0x68] sm:$0xff] }
  0xd1   :  { %v1200_v17 = vpack.c.bf16 %v599_v11, %v598_v10  ;;  %v848_v23 = vld [vmem:[#allocation7 + $0x60] sm:$0xff] }
  0xd2   :  { %v272_v28 = vmax.f32 %v268_v26, 0.0  ;;  %v271_v29 = vmax.f32 %v267_v27, 0.0  ;;  %v1212_v27 = vpack.c.bf16 %v849_v24, %v848_v23 }
  0xd4   :  { %277 = vst.msk [vmem:[#allocation2 + $0x18] sm:$0xff] %vm273_vm6, %v272_v28  ;;  %276 = vst.msk [vmem:[#allocation2 + $0x10] sm:$0xff] %vm273_vm6, %v271_v29  ;;  %v850_v29 = vld [vmem:[#allocation7 + $0x70] sm:$0xff] }
  0xd7   :  { %v278_v30 = vld [vmem:[#allocation2] ss:$2 sm:$0xff]  ;;  %v282_v31 = vld [vmem:[#allocation2 + $0x1] ss:$2 sm:$0xff] }
  0xd8   :  { %v285_v32 = vmax.f32 %v278_v30, %v282_v31  ;;  %v851_v30 = vld [vmem:[#allocation7 + $0x78] sm:$0xff] }
  0xd9   :  { %v1215_v31 = vpack.c.bf16 %v851_v30, %v850_v29 }
  0xda   :  { %1101 = vmatprep.mubr.msk.f32.mxu1 %vm273_vm6, %v285_v32  ;;  %v486_v38 = vrot.slane %v285_v32, 1  ;;  %v287_v39 = vrot.slane %v285_v32, 7 }
  0xdb   :  { %v280_v35 = vld [vmem:[#allocation2 + $0x10] ss:$2 sm:$0xff]  ;;  %v284_v36 = vld [vmem:[#allocation2 + $0x11] ss:$2 sm:$0xff] }
  0xdc   :  { %v286_v37 = vmax.f32 %v280_v35, %v284_v36  ;;  %v935_v35 = vld [vmem:[#allocation9] sm:$0xff]  ;;  %v936_v36 = vld [vmem:[#allocation9 + $0x8] sm:$0xff] }
  0xde   :  { %1102 = vmatmul.mubr.msk.f32.vlgmr.msra.gmra.mrb[0].mxu1 %vm273_vm6, %v286_v37  ;;  %v288_v40 = vrot.slane %v286_v37, 7  ;;  %v487_v41 = vrot.slane %v286_v37, 1  ;;  %v1218_v37 = vpack.c.bf16 %v936_v36, %v935_v35 }
  0xdf   :  { %1195 = vmatpush3.bf16.msra.mxu1 %v1194_v52  ;;  %1126 = vmatprep.mubr.msk.f32.mxu1 %vm1346_vm11, %v1347_v60 }
  0xe0   :  { %v290_v42 = vsel %vm85_vm0, %v288_v40, %v287_v39  ;;  %v289_v44 = vsel %vm85_vm0, %v287_v39, %v288_v40  ;;  %v488_v13 = vsel %vm213_vm3, %v486_v38, %v487_v41  ;;  %v489_v48 = vsel %vm213_vm3, %v487_v41, %v486_v38  ;;  %1196 = vmatprep.subr.bf16.mxu1 %v1345_v56  ;;  %v937_v38 = vld [vmem:[#allocation9 + $0x10] sm:$0xff]  ;;  %v938_v39 = vld [vmem:[#allocation9 + $0x18] sm:$0xff]  ;;  %v939_v41 = vld [vmem:[#allocation9 + $0x20] sm:$0xff] }
  0xe1   :  { %v317_v45 = vsel %vm315_vm7, %v290_v42, 0.0  ;;  %v318_v46 = vsel %vm316_vm8, %v289_v44, 0.0  ;;  %v492_v47 = vsel %vm490_vm9, %v488_v13, 0.0  ;;  %v493_v49 = vsel %vm491_vm10, %v489_v48, 0.0  ;;  %v940_v42 = vld [vmem:[#allocation9 + $0x28] sm:$0xff]  ;;  %v941_v13 = vld [vmem:[#allocation9 + $0x30] sm:$0xff] }
  0xe2   :  { %1108 = vmatprep.mubr.msk.f32.mxu0 %vm273_vm6, %v317_v45  ;;  %v1221_v40 = vpack.c.bf16 %v938_v39, %v937_v38  ;;  %v1224_v44 = vpack.c.bf16 %v940_v42, %v939_v41  ;;  %v942_v45 = vld [vmem:[#allocation9 + $0x38] sm:$0xff] }
  0xe3   :  { %1109 = vmatmul.mubr.msk.f32.vlgmr.msra.gmra.mrb[0].mxu0 %vm273_vm6, %v318_v46  ;;  %1198 = vmatpush3.bf16.msra.mxu1 %v1197_v59  ;;  %v1227_v46 = vpack.c.bf16 %v942_v45, %v941_v13  ;;  %v1054_v59 = vld [vmem:[%s1581_s8] ss:$0 sm:$0xff] }
  0xe4   :  { %1192 = vmatpush3.bf16.msra.mxu0 %v1496_v43  ;;  %1115 = vmatprep.mubr.msk.f32.mxu0 %vm273_vm6, %v492_v47  ;;  %v1206_v43 = vpack.c.bf16 %v765_v54, %v764_v53 }
  0xe5   :  { %1205 = vmatprep.subr.bf16.mxu0 %v1345_v56  ;;  %1199 = vmatprep.subr.bf16.mxu1 %v1345_v56 }
  0xeb   :  { %1116 = vmatmul.mubr.msk.f32.vlgmr.msra.gmra.mrb[0].mxu0 %vm273_vm6, %v493_v49 }
  0xec   :  { %1207 = vmatpush3.bf16.msra.mxu0 %v1206_v43  ;;  %1148 = vmatprep.mubr.msk.f32.mxu0 %vm1346_vm11, %v1347_v60  ;;  %v1053_v43 = vld [vmem:[%s1579_s6] ss:$0 sm:$0xff] }
  0xed   :  { %1208 = vmatprep.subr.bf16.mxu0 %v1345_v56 }
  0xf0   :  { %1210 = vmatpush3.bf16.msra.mxu0 %v1209_v61 }
  0xf1   :  { %1217 = vmatprep.subr.bf16.mxu0 %v1345_v56 }
 0x1b1   :  { %v1103_v62 = vpop.f32.mrb[0].mxu1 }
 0x1b2   :  { %v396_v63 = vpop.f32.mrb[1].mxu1 }
 0x1be   :  { %v1117_v0 = vpop.f32.mrb[0].mxu0 }
 0x1bf   :  { %v1229_v3 = vadd.f32 %v1117_v0, %v1103_v62  ;;  %v569_v4 = vpop.f32.mrb[1].mxu0 }
 0x1c0   :  { %v1230_v5 = vadd.f32 %v569_v4, %v396_v63 }
 0x1c1   :  { %v588_v6 = vadd.f32 %v1229_v3, %v1048_v1 }
 0x1c2   :  { %v587_v7 = vadd.f32 %v1230_v5, %v1048_v1 }
 0x1c3   :  { %v590_v8 = vmax.f32 %v588_v6, 0.0 }
 0x1c4   :  { %v589_v9 = vmax.f32 %v587_v7, 0.0 }
 0x1c5   :  { %593 = vst.msk [vmem:[#allocation3 + $0x8] sm:$0xff] %vm591_vm12, %v590_v8 }
 0x1c6   :  { %592 = vst.msk [vmem:[#allocation3] sm:$0xff] %vm591_vm12, %v589_v9 }
 0x1cd   :  { %v603_v15 = vld [vmem:[#allocation3 + $0x2] ss:$8 sm:$0x3]  ;;  %v605_v16 = vld [vmem:[#allocation3 + $0x3] ss:$8 sm:$0x3] }
 0x1ce   :  { %v606_v18 = vmax.f32 %v603_v15, %v605_v16  ;;  %v759_v19 = vld [vmem:[#allocation3 + $0x4] ss:$8 sm:$0x3]  ;;  %v761_v20 = vld [vmem:[#allocation3 + $0x5] ss:$8 sm:$0x3] }
 0x1cf   :  { %v762_v21 = vmax.f32 %v759_v19, %v761_v20  ;;  %v594_v25 = vld [vmem:[#allocation3] ss:$8 sm:$0x3]  ;;  %v596_v26 = vld [vmem:[#allocation3 + $0x1] ss:$8 sm:$0x3] }
 0x1d0   :  { %1127 = vmatmul.mubr.msk.f32.vlgmr.msra.gmra.mrb[2].mxu1 %vm591_vm12, %v606_v18  ;;  %v597_v28 = vmax.f32 %v594_v25, %v596_v26  ;;  %v843_v32 = vld [vmem:[#allocation3 + $0x6] ss:$8 sm:$0x3]  ;;  %v845_v33 = vld [vmem:[#allocation3 + $0x7] ss:$8 sm:$0x3] }
 0x1d1   :  { %1201 = vmatpush3.bf16.msra.mxu1 %v1200_v17  ;;  %1149 = vmatmul.mubr.msk.f32.vlgmr.msra.gmra.mrb[2].mxu0 %vm591_vm12, %v762_v21  ;;  %v846_v34 = vmax.f32 %v843_v32, %v845_v33 }
 0x1d2   :  { %1202 = vmatprep.subr.bf16.mxu1 %v1345_v56  ;;  %1137 = vmatprep.mubr.msk.f32.mxu1 %vm1346_vm11, %v1347_v60 }
 0x1d3   :  { %1178 = vmatprep.mubr.msk.f32.mxu0 %vm1346_vm11, %v1347_v60  ;;  %1219 = vmatpush3.bf16.msra.mxu0 %v1218_v37 }
 0x1d4   :  { %1220 = vmatprep.subr.bf16.mxu0 %v1345_v56 }
 0x1d5   :  { %1204 = vmatpush3.bf16.msra.mxu1 %v1203_v22 }
 0x1d6   :  { %1211 = vmatprep.subr.bf16.mxu1 %v1345_v56 }
 0x1d7   :  { %1222 = vmatpush3.bf16.msra.mxu0 %v1221_v40 }
 0x1d8   :  { %1138 = vmatmul.mubr.msk.f32.vlgmr.msra.gmra.mrb[4].mxu1 %vm591_vm12, %v597_v28  ;;  %1223 = vmatprep.subr.bf16.mxu0 %v1345_v56 }
 0x1d9   :  { %1213 = vmatpush3.bf16.msra.mxu1 %v1212_v27  ;;  %1159 = vmatprep.mubr.msk.f32.mxu1 %vm1346_vm11, %v1347_v60 }
 0x1da   :  { %1214 = vmatprep.subr.bf16.mxu1 %v1345_v56 }
 0x1db   :  { %1225 = vmatpush3.bf16.msra.mxu0 %v1224_v44 }
 0x1dc   :  { %1226 = vmatprep.subr.bf16.mxu0 %v1345_v56 }
 0x1dd   :  { %1216 = vmatpush3.bf16.msra.mxu1 %v1215_v31 }
 0x1df   :  { %1228 = vmatpush3.bf16.msra.mxu0 %v1227_v46 }
 0x1e0   :  { %1160 = vmatmul.mubr.msk.f32.vlgmr.msra.gmra.mrb[6].mxu1 %vm591_vm12, %v846_v34 }
 0x2a3   :  { %v681_v47 = vpop.f32.mrb[2].mxu1 }
 0x2a4   :  { %v837_v48 = vpop.f32.mrb[2].mxu0  ;;  %v1128_v49 = vpop.f32.mrb[3].mxu1 }
 0x2a5   :  { %v1150_v50 = vpop.f32.mrb[3].mxu0 }
 0x2ab   :  { %v754_v51 = vpop.f32.mrb[4].mxu1 }
 0x2ac   :  { %v755_v52 = vadd.f32 %v754_v51, %v681_v47  ;;  %v1139_v53 = vpop.f32.mrb[5].mxu1 }
 0x2ae   :  { %v841_v54 = vadd.f32 %v837_v48, %v755_v52 }
 0x2b3   :  { %v921_v55 = vpop.f32.mrb[6].mxu1 }
 0x2b4   :  { %v925_v57 = vadd.f32 %v921_v55, %v841_v54  ;;  %v1161_v58 = vpop.f32.mrb[7].mxu1 }
 0x2b6   :  { %v933_v56 = vadd.f32 %v1053_v43, %v925_v57 }
 0x2b8   :  { %v934_v2 = vmax.f32 %v933_v56, 0.0 }
 0x2ba   :  { %1179 = vmatmul.mubr.msk.f32.vlgmr.msra.gmra.mrb[4].mxu0 %vm950_vm13, %v934_v2 }
 0x38d   :  { %v1020_v60 = vpop.f32.mrb[4].mxu0 }
 0x38e   :  { %v1021_v61 = vadd.f32 %v1054_v59, %v1020_v60  ;;  %v1180_v62 = vpop.f32.mrb[5].mxu0 }
 0x390   :  { %1024 = vst [vmem:[#allocation10] sm:$0x3] %v1021_v61 }
 0x391   :  { %1322 = shalt.err (!%p1319_p0)
}
 0x392   :  { %s1323_s20 = scalar_lea.hbm %s1582_s9, 32 }
 0x393   :  { %p1324_p1 = scmp.ne.s32.totalorder %s1582_s9, %s1323_s20  ;;  %p1327_p2 = scmp.lt.u32.totalorder %s1323_s20, %s1582_s9 }
 0x395   :  { %p1329_p3 = pnand %p1327_p2, %p1324_p1 }
 0x397   :  { %1332 = shalt.err (!%p1329_p3)
}
 0x398   :  { %1034 = dma.vmem_to_hbm [thread:$0]  %s1032_s17, 32, %s1582_s9, [#allocation6]  }
 0x399   :  { %1337 = dma.done.wait [#allocation6], 32  }
 0x39a   :  { %1338 = vsyncadd [#allocation6], 4294967264 }
 0x39b   :  { %1038 = vsyncpa [#allocation5], 1 }
 0x39c   :  { %1039 = vsyncpa [#allocation8], 1 }
 0x39d   :  { %1040 = vsyncpa [#allocation6], 1 }

</bundles_post_ra>
